<compile_context>
chip_gen: v7x
topology: tpu7x:2x2x1
jax: 0.10.0
libtpu: 0.0.40
codegen_flags: <defaults>
</compile_context>

<pallas_src>
import math

import jax
import jax.numpy as jnp
from jax.experimental import pallas as pl
from jax.experimental.pallas import tpu as pltpu


# Below this element count the pure-jnp path (XLA fusion) is strictly faster
# than a standalone pallas_call on every TPU generation.
_SMALL_N = 1 << 14


def _round_up(x, m):
    return (x + m - 1) // m * m


def _coord_loss_jnp(coord_out, coord_gt, valid, is_3D):
    """Reference / small-shape path (identical to the PyTorch forward)."""
    v = jnp.asarray(valid)
    if v.ndim == 2:
        v = v[:, :, None]
    loss = jnp.abs(coord_out - coord_gt) * v
    if is_3D is not None:
        is3 = jnp.asarray(is_3D).astype(jnp.float32)[:, None, None]
        loss = jnp.concatenate([loss[:, :, :2], loss[:, :, 2:] * is3], axis=2)
    return loss


def _choose_block_rows(n_rows, width, itemsize, sub, budget_bytes=16 << 20):
    """Rows per grid step for the lane-folded (n_rows, width) layout.

    VMEM footprint per row = 4 row buffers (out, gt, mask, loss), each
    double-buffered by the Pallas pipeline, at the lane-padded width.
    """
    if n_rows <= sub:
        return n_rows                               # single full-extent block
    lane_bytes = _round_up(width, 128) * itemsize
    per_row = 4 * 2 * lane_bytes
    tr = max(sub, (budget_bytes // per_row) // sub * sub)
    # v7x: keep >= 2 grid steps whenever there is room, so ("parallel",) can
    # shard the batch tiles (and their HBM bandwidth) across both TensorCores.
    if n_rows > 2 * sub:
        tr = min(tr, _round_up(pl.cdiv(n_rows, 2), sub))
    return min(tr, _round_up(n_rows, sub))


def _coord_loss_kernel(out_ref, gt_ref, mask_ref, loss_ref):
    # Pure elementwise hot path on a lane-dense (tr, W) block.
    # NOTE: padding rows of a partial last block compute on unspecified data,
    # but those rows are never written back -- do NOT add reductions in here.
    diff = jnp.abs(out_ref[...] - gt_ref[...])
    loss_ref[...] = (diff * mask_ref[...]).astype(loss_ref.dtype)


def coord_loss(coord_out, coord_gt, valid, is_3D=None, *,
               block_rows=None, force_pallas=False):
    """Pallas implementation of CoordLoss.forward.

    coord_out, coord_gt: (B, J, C) float arrays
    valid:               (B, J, 1), (B, J) or (B, J, C) mask, broadcast over C
    is_3D:               optional (B,) 0/1 flags; scales the z-part (C >= 2)
    returns:             (B, J, C) elementwise loss (no reduction)
    """
    coord_out = jnp.asarray(coord_out)
    coord_gt = jnp.asarray(coord_gt)
    valid = jnp.asarray(valid)
    assert coord_out.shape == coord_gt.shape and coord_out.ndim == 3, \
        "coord_out / coord_gt must be (B, J, C)"
    B, J, C = coord_out.shape
    D = J * C

    out_dtype = jnp.result_type(coord_out.dtype, coord_gt.dtype, valid.dtype)
    if is_3D is not None:
        out_dtype = jnp.result_type(out_dtype, jnp.float32)

    # ---- small-shape escape hatch: leave it to XLA fusion -------------------
    if (B * D <= _SMALL_N) and not force_pallas:
        return _coord_loss_jnp(coord_out, coord_gt, valid, is_3D).astype(out_dtype)

    # ---- wrapper-side combined mask (valid broadcast over C, x z-factor) ----
    v = valid
    if v.ndim == 2:
        v = v[:, :, None]
    mask3 = jnp.broadcast_to(v, (B, J, C)).astype(out_dtype)
    if is_3D is not None:
        is3 = jnp.asarray(is_3D).reshape(B, 1, 1).astype(out_dtype)
        z_col = (jnp.arange(C, dtype=jnp.int32) >= 2)[None, None, :]
        mask3 = mask3 * jnp.where(z_col, is3, 1.0).astype(out_dtype)

    # ---- lane-density fold: merge whole batch rows into the lane axis -------
    # Free row-major reshape.  FB = gcd(B, 128) always divides B; for D = 63
    # and B % 128 == 0 this yields 8064-wide rows (a multiple of 128), so every
    # store is an unmasked full-vreg vst and DMAs carry no lane padding.
    FB = math.gcd(B, 128)
    RB, W = B // FB, FB * D
    out2 = coord_out.reshape(RB, W)
    gt2 = coord_gt.reshape(RB, W)
    mask2 = mask3.reshape(RB, W)

    itemsizes = [out2.dtype.itemsize, gt2.dtype.itemsize,
                 mask2.dtype.itemsize, jnp.result_type(out_dtype).itemsize]
    max_item = max(itemsizes)
    # Minimum sublane tile multiple for the narrowest participating dtype
    # (f32 -> 8, bf16 -> 16, int8/fp8 -> 32).
    sub = 8 * max(1, 4 // min(itemsizes))

    tr = block_rows if block_rows is not None else _choose_block_rows(
        RB, W, max_item, sub)

    # Explicit VMEM limit tied to the actual double-buffered footprint; stays
    # below v7x's 64 MiB physical VMEM (and within v5e/v6e capacity).
    footprint = 4 * 2 * tr * _round_up(W, 128) * max_item
    vmem_limit = int(min(max(2 * footprint, 16 << 20), 48 << 20))

    bytes_accessed = (out2.size * out2.dtype.itemsize
                      + gt2.size * gt2.dtype.itemsize
                      + mask2.size * mask2.dtype.itemsize
                      + B * D * jnp.result_type(out_dtype).itemsize)
    cost = pl.CostEstimate(flops=2 * B * D, transcendentals=0,
                           bytes_accessed=int(bytes_accessed))

    spec = pl.BlockSpec((tr, W), lambda i: (i, 0))
    loss2 = pl.pallas_call(
        _coord_loss_kernel,
        out_shape=jax.ShapeDtypeStruct((RB, W), out_dtype),
        grid=(pl.cdiv(RB, tr),),
        in_specs=[spec, spec, spec],
        out_specs=spec,
        compiler_params=pltpu.CompilerParams(
            dimension_semantics=("parallel",),   # shard batch tiles on v7x TCs
            vmem_limit_bytes=vmem_limit,
        ),
        cost_estimate=cost,
    )(out2, gt2, mask2)

    return loss2.reshape(B, J, C)


if __name__ == "__main__":
    key = jax.random.PRNGKey(0)
    k1, k2, k3, k4 = jax.random.split(key, 4)

    # Real module shapes: batch=2, 21 hand joints, xyz coords.
    B, J, C = 2, 21, 3
    coord_out = jax.random.normal(k1, (B, J, C), dtype=jnp.float32)
    coord_gt = jax.random.normal(k2, (B, J, C), dtype=jnp.float32)
    valid = (jax.random.uniform(k3, (B, J, 1)) > 0.3).astype(jnp.float32)
    is_3D = (jax.random.uniform(k4, (B,)) > 0.5).astype(jnp.float32)

    ref = jnp.abs(coord_out - coord_gt) * valid
    ref = jnp.concatenate([ref[:, :, :2], ref[:, :, 2:] * is_3D[:, None, None]],
                          axis=2)

    # 1) Small-shape path (escape hatch -> plain jnp, fused by XLA).
    loss_small = jax.block_until_ready(coord_loss(coord_out, coord_gt, valid, is_3D))
    assert loss_small.shape == (B, J, C)
    assert jnp.allclose(loss_small, ref, atol=1e-6), "mismatch (small/jnp path)"

    # 2) Force the Pallas kernel at the tiny shape (single-block code path).
    loss_forced = jax.block_until_ready(
        coord_loss(coord_out, coord_gt, valid, is_3D, force_pallas=True))
    assert jnp.allclose(loss_forced, ref, atol=1e-6), "mismatch (forced pallas, is_3D)"

    loss_no3d = jax.block_until_ready(
        coord_loss(coord_out, coord_gt, valid, None, force_pallas=True))
    assert jnp.allclose(loss_no3d, jnp.abs(coord_out - coord_gt) * valid,
                        atol=1e-6), "mismatch (forced pallas, no is_3D)"

    # 3) Large-batch path: lane-dense fold (B=512 -> rows of 128*63 = 8064 lanes).
    kb1, kb2, kb3, kb4 = jax.random.split(jax.random.PRNGKey(0), 4)
    Bb = 512
    co_b = jax.random.normal(kb1, (Bb, J, C), dtype=jnp.float32)
    cg_b = jax.random.normal(kb2, (Bb, J, C), dtype=jnp.float32)
    va_b = (jax.random.uniform(kb3, (Bb, J, 1)) > 0.3).astype(jnp.float32)
    i3_b = (jax.random.uniform(kb4, (Bb,)) > 0.5).astype(jnp.float32)

    loss_b = jax.block_until_ready(coord_loss(co_b, cg_b, va_b, i3_b))
    ref_b = jnp.abs(co_b - cg_b) * va_b
    ref_b = jnp.concatenate([ref_b[:, :, :2], ref_b[:, :, 2:] * i3_b[:, None, None]],
                            axis=2)
    assert loss_b.shape == (Bb, J, C)
    assert jnp.allclose(loss_b, ref_b, atol=1e-6), "mismatch (large-B pallas path)"

    print("KERNEL_OK")
</pallas_src>

<mosaic_0001>
module attributes {stable_mosaic.version = 11 : i64} {
  func.func @_coord_loss_kernel(%arg0: i32, %arg1: memref<1x126xf32, #tpu.memory_space<vmem>>, %arg2: memref<1x126xf32, #tpu.memory_space<vmem>>, %arg3: memref<1x126xf32, #tpu.memory_space<vmem>>, %arg4: memref<1x126xf32, #tpu.memory_space<vmem>>) attributes {dimension_semantics = [#tpu.dimension_semantics<parallel>], iteration_bounds = array<i64: 1>, scalar_prefetch = 0 : i64, scratch_operands = 0 : i64, tpu.core_type = #tpu.core_type<tc>, window_params = [{transform_indices = @transform_0, window_bounds = array<i64: 1, 126>}, {transform_indices = @transform_1, window_bounds = array<i64: 1, 126>}, {transform_indices = @transform_2, window_bounds = array<i64: 1, 126>}, {transform_indices = @transform_3, window_bounds = array<i64: 1, 126>}]} {
    %c0 = arith.constant 0 : index
    %c0_0 = arith.constant 0 : index
    %0 = vector.load %arg1[%c0, %c0_0] : memref<1x126xf32, #tpu.memory_space<vmem>>, vector<1x126xf32>
    %c0_1 = arith.constant 0 : index
    %c0_2 = arith.constant 0 : index
    %1 = vector.load %arg2[%c0_1, %c0_2] : memref<1x126xf32, #tpu.memory_space<vmem>>, vector<1x126xf32>
    %2 = arith.subf %0, %1 : vector<1x126xf32>
    %3 = math.absf %2 : vector<1x126xf32>
    %c0_3 = arith.constant 0 : index
    %c0_4 = arith.constant 0 : index
    %4 = vector.load %arg3[%c0_3, %c0_4] : memref<1x126xf32, #tpu.memory_space<vmem>>, vector<1x126xf32>
    %5 = arith.mulf %3, %4 : vector<1x126xf32>
    %c0_5 = arith.constant 0 : index
    %c0_6 = arith.constant 0 : index
    %6 = vector.load %arg4[%c0_5, %c0_6] : memref<1x126xf32, #tpu.memory_space<vmem>>, vector<1x126xf32>
    tpu.vector_store %arg4[%c0_5, %c0_6], %5 {strides = array<i32>} : memref<1x126xf32, #tpu.memory_space<vmem>>, vector<1x126xf32>,
    return
  }
  func.func @transform_0(%arg0: i32) -> (i32, i32) {
    %c0_i32 = arith.constant 0 : i32
    %c0_i32_0 = arith.constant 0 : i32
    return %arg0, %c0_i32 : i32, i32
  }
  func.func @transform_1(%arg0: i32) -> (i32, i32) {
    %c0_i32 = arith.constant 0 : i32
    %c0_i32_0 = arith.constant 0 : i32
    return %arg0, %c0_i32 : i32, i32
  }
  func.func @transform_2(%arg0: i32) -> (i32, i32) {
    %c0_i32 = arith.constant 0 : i32
    %c0_i32_0 = arith.constant 0 : i32
    return %arg0, %c0_i32 : i32, i32
  }
  func.func @transform_3(%arg0: i32) -> (i32, i32) {
    %c0_i32 = arith.constant 0 : i32
    %c0_i32_0 = arith.constant 0 : i32
    return %arg0, %c0_i32 : i32, i32
  }
}

</mosaic_0001>

<bundles_post_ra>
// kernel: tpu_custom_call.1
= control target key start
LH: loop header
LB: loop body
LE: loop exit
PB: predicated region body
PF: predicated region fallthrough
CT: control target
= control target key end

     0   :  { %8 = vsyncpa [#allocation3], 0  ;;  %s152_s0 = inlined_call_operand.hbm [shape: f32[1,126], index: 0, kind: input, shape index: {}]   ;;  %s153_s1 = inlined_call_operand.vmem [shape: f32[1,126], index: 1, kind: input, shape index: {}]   ;;  %s154_s2 = inlined_call_operand.vmem [shape: f32[1,126], index: 2, kind: input, shape index: {}]   ;;  %s155_s3 = inlined_call_operand.hbm [shape: f32[1,126], index: 3, kind: output, shape index: {}]  }
   0x1   :  { %9 = vsyncpa [#allocation4], 0  ;;  %s100_s12 = smov [#allocation2]   ;;  %s52_s16 = scalar_lea.hbm %s152_s0, 16 }
   0x2   :  { %s16_s13 = sshll.u32 %s100_s12, 4  ;;  %p53_p0 = scmp.ne.s32.totalorder %s152_s0, %s52_s16  ;;  %s17_s13 = int_to_ptr.vmem [resolvable:$true] %s16_s13 }
   0x3   :  { %p56_p1 = scmp.lt.u32.totalorder %s52_s16, %s152_s0 }
   0x5   :  { %p58_p2 = pnand %p56_p1, %p53_p0 }
   0x7   :  { %61 = shalt.err (!%p58_p2)
}
   0x8   :  { %s62_s21 = scalar_lea.vmem %s17_s13, 16  ;;  %s66_s22 = scalar_lea.vmem %s17_s13, 32 }
   0x9   :  { %p63_p3 = scmp.ne.s32.totalorder %s17_s13, %s62_s21  ;;  %p67_p4 = scmp.lt.s32.totalorder %s17_s13, %s17_s13 }
   0xa   :  { %p68_p5 = scmp.lt.s32.totalorder %s66_s22, %s62_s21 }
   0xc   :  { %p69_p6 = por %p68_p5, %p67_p4 }
   0xe   :  { %p70_p7 = pnand %p69_p6, %p63_p3 }
  0x10   :  { %73 = shalt.err (!%p70_p7)
}
  0x11   :  { %19 = dma.hbm_to_vmem [thread:$0]  %s152_s0, 16, %s17_s13, [#allocation3]  }
  0x12   :  { %96 = dma.done.wait [#allocation3], 16  }
  0x13   :  { %97 = vsyncadd [#allocation3], 4294967280  ;;  %v27_v0 = vld [vmem:[#allocation2] sm:$0x1]  ;;  %s101_s29 = smov [#allocation5]   ;;  %vm33_vm0 = vcmask 1024000  }
  0x14   :  { %v28_v1 = vld [vmem:[%s153_s1] sm:$0x1]  ;;  %s41_s30 = sshll.u32 %s101_s29, 4  ;;  %s42_s30 = int_to_ptr.vmem [resolvable:$true] %s41_s30 }
  0x15   :  { %v29_v2 = vsub.f32 %v27_v0, %v28_v1  ;;  %v31_v3 = vld [vmem:[%s154_s2] sm:$0x1]  ;;  %s74_s0 = scalar_lea.vmem %s42_s30, 16  ;;  %s78_s4 = scalar_lea.vmem %s42_s30, 32 }
  0x16   :  { %p75_p8 = scmp.ne.s32.totalorder %s42_s30, %s74_s0  ;;  %p79_p9 = scmp.lt.s32.totalorder %s42_s30, %s42_s30 }
  0x17   :  { %v30_v4 = vand.u32 2147483647, %v29_v2  ;;  %p80_p10 = scmp.lt.s32.totalorder %s78_s4, %s74_s0 }
  0x19   :  { %v32_v5 = vmul.f32 %v31_v3, %v30_v4  ;;  %p81_p11 = por %p80_p10, %p79_p9 }
  0x1b   :  { %34 = vst.msk [vmem:[#allocation5] sm:$0x1] %vm33_vm0, %v32_v5  ;;  %p82_p12 = pnand %p81_p11, %p75_p8 }
  0x1d   :  { %85 = shalt.err (!%p82_p12)
}
  0x1e   :  { %s86_s6 = scalar_lea.hbm %s155_s3, 16 }
  0x1f   :  { %p87_p13 = scmp.ne.s32.totalorder %s155_s3, %s86_s6  ;;  %p90_p0 = scmp.lt.u32.totalorder %s86_s6, %s155_s3 }
  0x21   :  { %p92_p1 = pnand %p90_p0, %p87_p13 }
  0x23   :  { %95 = shalt.err (!%p92_p1)
}
  0x24   :  { %44 = dma.vmem_to_hbm [thread:$0]  %s42_s30, 16, %s155_s3, [#allocation4]  }
  0x25   :  { %98 = dma.done.wait [#allocation4], 16  }
  0x26   :  { %99 = vsyncadd [#allocation4], 4294967280 }
  0x27   :  { %48 = vsyncpa [#allocation3], 1 }
  0x28   :  { %49 = vsyncpa [#allocation4], 1 }

</bundles_post_ra>
